<compile_context>
chip_gen: v7x
topology: tpu7x:2x2x1
jax: 0.10.0
libtpu: 0.0.40
codegen_flags: <defaults>
</compile_context>

<pallas_src>
import math

import jax
import jax.numpy as jnp
from jax.experimental import pallas as pl
from jax.experimental.pallas import tpu as pltpu

EPS = 1e-6
_HALF_LOG_2PI = 0.5 * math.log(2.0 * math.pi)


def _round_up(a, m):
    return ((a + m - 1) // m) * m


def _lgamma_xp1(x):
    """lgamma(x + 1) for x >= 0, built from ops with guaranteed Mosaic lowerings.

    lgamma(x+1) = lgamma(x+6) - log((x+1)(x+2)(x+3)(x+4)(x+5)), with
    lgamma(z) ~= (z-0.5)*log(z) - z + 0.5*log(2*pi) + 1/(12 z) - 1/(360 z^3).
    Max abs error ~1e-6 over x >= 0 (next neglected term ~ 1/(1260 * 6^5)).
    Cost: 2 logs + 1 divide per element (EUP) plus a handful of VPU mul/add.
    """
    z = x + 6.0
    zi = 1.0 / z
    series = zi * ((1.0 / 12.0) - (zi * zi) * (1.0 / 360.0))
    stirling = (z - 0.5) * jnp.log(z) - z + _HALF_LOG_2PI + series
    shift = (x + 1.0) * (x + 2.0) * (x + 3.0) * (x + 4.0) * (x + 5.0)
    return stirling - jnp.log(shift)


def _poisson_rowsum_kernel(s_ref, x_ref, w_ref, b_ref, o_ref):
    """One row tile; rows are flattened (batch, time) positions.

    s_ref: (R, dx)   latent samples rows
    x_ref: (R, dy)   observed counts
    w_ref: (dx, dy)  decoder weight, pre-transposed (resident across steps)
    b_ref: (1, dy)   decoder bias (resident across steps)
    o_ref: (R, 1)    per-row sum over dy of the full Poisson log-prob
    """
    z = jnp.dot(s_ref[...], w_ref[...],
                preferred_element_type=jnp.float32) + b_ref[...]        # (R, dy)

    # Numerically-stable softplus: max(z, 0) + log(1 + exp(-|z|)).
    # (log(1+e) kept instead of log1p for guaranteed Mosaic lowering.)
    sp = jnp.maximum(z, 0.0) + jnp.log(1.0 + jnp.exp(-jnp.abs(z)))
    rates = sp + EPS

    xv = x_ref[...]
    lp = xv * jnp.log(rates) - rates - _lgamma_xp1(xv)                  # (R, dy)

    o_ref[...] = jnp.sum(lp, axis=-1, keepdims=True)                    # (R, 1)


def poisson_decoder_forward(samples, x, w, b, *, max_tile_rows=2048,
                            vmem_budget_bytes=8 * 1024 * 1024,
                            matmul_dtype=jnp.float32):
    """samples: (B,T,dx), x: (B,T,dy), w: (dx,dy) pre-transposed, b: (dy,) -> (B,) f32."""
    B, T, dx = samples.shape
    dy = w.shape[1]
    assert x.shape == (B, T, dy)

    samples = samples.astype(jnp.float32)
    x = x.astype(jnp.float32)
    w = w.astype(jnp.float32)
    b = b.astype(jnp.float32)

    # Fold (B, T) into N rows; pick a row tile that amortizes per-step overhead
    # while keeping double-buffered (samples + x) row blocks inside a modest
    # VMEM budget (valid on v5e/v6e/v7x without raising vmem limits).
    N = B * T
    bytes_per_row = 2 * 4 * (dx + dy)            # double-buffered f32 inputs
    rows_budget = max(8, vmem_budget_bytes // max(bytes_per_row, 1))
    tile_rows = min(max_tile_rows, rows_budget, _round_up(N, 8))
    tile_rows = max(8, (tile_rows // 8) * 8)
    n_pad = _round_up(N, tile_rows)

    s2 = samples.reshape(N, dx)
    x2 = x.reshape(N, dy)
    if n_pad != N:        # padded rows produce finite junk, sliced away below
        s2 = jnp.pad(s2, ((0, n_pad - N), (0, 0)))
        x2 = jnp.pad(x2, ((0, n_pad - N), (0, 0)))
    b2 = b.reshape(1, dy)

    # Optional bf16 matmul operands (halves samples/W DMA; MXU is bf16-native).
    # Default stays f32 for exact parity with the f32 reference.
    s2 = s2.astype(matmul_dtype)
    w = w.astype(matmul_dtype)

    grid = (n_pad // tile_rows,)

    row_lp = pl.pallas_call(
        _poisson_rowsum_kernel,
        out_shape=jax.ShapeDtypeStruct((n_pad, 1), jnp.float32),
        grid_spec=pltpu.PrefetchScalarGridSpec(
            num_scalar_prefetch=0,
            grid=grid,
            in_specs=[
                pl.BlockSpec((tile_rows, dx), lambda i: (i, 0)),   # samples rows
                pl.BlockSpec((tile_rows, dy), lambda i: (i, 0)),   # x rows
                pl.BlockSpec((dx, dy), lambda i: (0, 0)),          # W (resident)
                pl.BlockSpec((1, dy), lambda i: (0, 0)),           # b (resident)
            ],
            out_specs=pl.BlockSpec((tile_rows, 1), lambda i: (i, 0)),
        ),
        compiler_params=pltpu.CompilerParams(
            dimension_semantics=("parallel",)),    # row blocks shard across cores
    )(s2, x2, w, b2)

    # Tiny final per-batch sum over T (B*T scalars total), in plain JAX.
    return jnp.sum(row_lp[:N, 0].reshape(B, T), axis=-1)


def _reference(samples, x, w, b):
    z = samples @ w + b[None, None, :]
    rates = jax.nn.softplus(z) + EPS
    lp = x * jnp.log(rates) - rates - jax.lax.lgamma(x + 1.0)
    return jnp.sum(lp, axis=(-1, -2))


if __name__ == "__main__":
    B, T, dx, dy = 2, 8, 32, 16

    key = jax.random.PRNGKey(0)
    k_w, k_b, k_s, k_x = jax.random.split(key, 4)

    # Deterministic nn.Linear-style init: U(-1/sqrt(dx), 1/sqrt(dx)).
    bound = 1.0 / jnp.sqrt(jnp.float32(dx))
    w = jax.random.uniform(k_w, (dx, dy), jnp.float32, -bound, bound)  # already transposed
    b = jax.random.uniform(k_b, (dy,), jnp.float32, -bound, bound)

    samples = jax.random.normal(k_s, (B, T, dx), jnp.float32)
    # Poisson-like nonnegative integer counts for x.
    x = jax.random.poisson(k_x, lam=2.0, shape=(B, T, dy)).astype(jnp.float32)

    out = poisson_decoder_forward(samples, x, w, b)
    out = jax.block_until_ready(out)

    ref = _reference(samples, x, w, b)
    assert jnp.allclose(out, ref, rtol=1e-4, atol=1e-3), (out, ref)

    print("KERNEL_OK")
</pallas_src>

<mosaic_0001>
module attributes {stable_mosaic.version = 11 : i64} {
  func.func @_poisson_rowsum_kernel(%arg0: i32, %arg1: memref<16x32xf32, #tpu.memory_space<vmem>>, %arg2: memref<16x16xf32, #tpu.memory_space<vmem>>, %arg3: memref<32x16xf32, #tpu.memory_space<vmem>>, %arg4: memref<1x16xf32, #tpu.memory_space<vmem>>, %arg5: memref<16x1xf32, #tpu.memory_space<vmem>>) attributes {dimension_semantics = [#tpu.dimension_semantics<parallel>], iteration_bounds = array<i64: 1>, scalar_prefetch = 0 : i64, scratch_operands = 0 : i64, tpu.core_type = #tpu.core_type<tc>, window_params = [{transform_indices = @transform_0, window_bounds = array<i64: 16, 32>}, {transform_indices = @transform_1, window_bounds = array<i64: 16, 16>}, {pipeline_mode = #tpu.pipeline_mode<synchronous>, transform_indices = @transform_2, window_bounds = array<i64: 32, 16>}, {pipeline_mode = #tpu.pipeline_mode<synchronous>, transform_indices = @transform_3, window_bounds = array<i64: 1, 16>}, {transform_indices = @transform_4, window_bounds = array<i64: 16, 1>}]} {
    %c0 = arith.constant 0 : index
    %c0_0 = arith.constant 0 : index
    %0 = vector.load %arg1[%c0, %c0_0] : memref<16x32xf32, #tpu.memory_space<vmem>>, vector<16x32xf32>
    %c0_1 = arith.constant 0 : index
    %c0_2 = arith.constant 0 : index
    %1 = vector.load %arg3[%c0_1, %c0_2] : memref<32x16xf32, #tpu.memory_space<vmem>>, vector<32x16xf32>
    %cst = arith.constant dense<0.000000e+00> : vector<16x16xf32>
    %2 = tpu.matmul %0, %1, %cst {dimension_numbers = #tpu.dot_dimension_numbers<[1], [0], [0], [1], [0, 0, 1, 1], [], []>} : vector<16x32xf32>, vector<32x16xf32>, vector<16x16xf32> -> vector<16x16xf32>
    %c0_3 = arith.constant 0 : index
    %c0_4 = arith.constant 0 : index
    %3 = vector.load %arg4[%c0_3, %c0_4] : memref<1x16xf32, #tpu.memory_space<vmem>>, vector<1x16xf32>
    %4 = vector.broadcast %3 : vector<1x16xf32> to vector<16x16xf32>
    %5 = arith.addf %2, %4 : vector<16x16xf32>
    %cst_5 = arith.constant 0.000000e+00 : f32
    %6 = vector.broadcast %cst_5 : f32 to vector<16x16xf32>
    %7 = arith.maximumf %5, %6 : vector<16x16xf32>
    %8 = math.absf %5 : vector<16x16xf32>
    %cst_6 = arith.constant 0.000000e+00 : f32
    %9 = vector.broadcast %cst_6 : f32 to vector<16x16xf32>
    %10 = arith.subf %9, %8 : vector<16x16xf32>
    %11 = math.exp %10 : vector<16x16xf32>
    %cst_7 = arith.constant 1.000000e+00 : f32
    %12 = vector.broadcast %cst_7 : f32 to vector<16x16xf32>
    %13 = arith.addf %12, %11 : vector<16x16xf32>
    %14 = math.log %13 : vector<16x16xf32>
    %15 = arith.addf %7, %14 : vector<16x16xf32>
    %cst_8 = arith.constant 9.99999997E-7 : f32
    %16 = vector.broadcast %cst_8 : f32 to vector<16x16xf32>
    %17 = arith.addf %15, %16 : vector<16x16xf32>
    %c0_9 = arith.constant 0 : index
    %c0_10 = arith.constant 0 : index
    %18 = vector.load %arg2[%c0_9, %c0_10] : memref<16x16xf32, #tpu.memory_space<vmem>>, vector<16x16xf32>
    %19 = math.log %17 : vector<16x16xf32>
    %20 = arith.mulf %18, %19 : vector<16x16xf32>
    %21 = arith.subf %20, %17 : vector<16x16xf32>
    %cst_11 = arith.constant 6.000000e+00 : f32
    %22 = vector.broadcast %cst_11 : f32 to vector<16x16xf32>
    %23 = arith.addf %18, %22 : vector<16x16xf32>
    %cst_12 = arith.constant 1.000000e+00 : f32
    %24 = vector.broadcast %cst_12 : f32 to vector<16x16xf32>
    %25 = arith.divf %24, %23 : vector<16x16xf32>
    %26 = arith.mulf %25, %25 : vector<16x16xf32>
    %cst_13 = arith.constant 0.00277777785 : f32
    %27 = vector.broadcast %cst_13 : f32 to vector<16x16xf32>
    %28 = arith.mulf %26, %27 : vector<16x16xf32>
    %cst_14 = arith.constant 0.0833333358 : f32
    %29 = vector.broadcast %cst_14 : f32 to vector<16x16xf32>
    %30 = arith.subf %29, %28 : vector<16x16xf32>
    %31 = arith.mulf %25, %30 : vector<16x16xf32>
    %cst_15 = arith.constant 5.000000e-01 : f32
    %32 = vector.broadcast %cst_15 : f32 to vector<16x16xf32>
    %33 = arith.subf %23, %32 : vector<16x16xf32>
    %34 = math.log %23 : vector<16x16xf32>
    %35 = arith.mulf %33, %34 : vector<16x16xf32>
    %36 = arith.subf %35, %23 : vector<16x16xf32>
    %cst_16 = arith.constant 0.918938517 : f32
    %37 = vector.broadcast %cst_16 : f32 to vector<16x16xf32>
    %38 = arith.addf %36, %37 : vector<16x16xf32>
    %39 = arith.addf %38, %31 : vector<16x16xf32>
    %cst_17 = arith.constant 1.000000e+00 : f32
    %40 = vector.broadcast %cst_17 : f32 to vector<16x16xf32>
    %41 = arith.addf %18, %40 : vector<16x16xf32>
    %cst_18 = arith.constant 2.000000e+00 : f32
    %42 = vector.broadcast %cst_18 : f32 to vector<16x16xf32>
    %43 = arith.addf %18, %42 : vector<16x16xf32>
    %44 = arith.mulf %41, %43 : vector<16x16xf32>
    %cst_19 = arith.constant 3.000000e+00 : f32
    %45 = vector.broadcast %cst_19 : f32 to vector<16x16xf32>
    %46 = arith.addf %18, %45 : vector<16x16xf32>
    %47 = arith.mulf %44, %46 : vector<16x16xf32>
    %cst_20 = arith.constant 4.000000e+00 : f32
    %48 = vector.broadcast %cst_20 : f32 to vector<16x16xf32>
    %49 = arith.addf %18, %48 : vector<16x16xf32>
    %50 = arith.mulf %47, %49 : vector<16x16xf32>
    %cst_21 = arith.constant 5.000000e+00 : f32
    %51 = vector.broadcast %cst_21 : f32 to vector<16x16xf32>
    %52 = arith.addf %18, %51 : vector<16x16xf32>
    %53 = arith.mulf %50, %52 : vector<16x16xf32>
    %54 = math.log %53 : vector<16x16xf32>
    %55 = arith.subf %39, %54 : vector<16x16xf32>
    %56 = arith.subf %21, %55 : vector<16x16xf32>
    %cst_22 = arith.constant dense<0.000000e+00> : vector<16xf32>
    %57 = vector.multi_reduction <add>, %56, %cst_22 [1] : vector<16x16xf32> to vector<16xf32>
    %58 = vector.shape_cast %57 : vector<16xf32> to vector<16x1xf32>
    %c0_23 = arith.constant 0 : index
    %c0_24 = arith.constant 0 : index
    %59 = vector.load %arg5[%c0_23, %c0_24] : memref<16x1xf32, #tpu.memory_space<vmem>>, vector<16x1xf32>
    tpu.vector_store %arg5[%c0_23, %c0_24], %58 {strides = array<i32>} : memref<16x1xf32, #tpu.memory_space<vmem>>, vector<16x1xf32>,
    return
  }
  func.func @transform_0(%arg0: i32) -> (i32, i32) {
    %c0_i32 = arith.constant 0 : i32
    %c0_i32_0 = arith.constant 0 : i32
    return %arg0, %c0_i32 : i32, i32
  }
  func.func @transform_1(%arg0: i32) -> (i32, i32) {
    %c0_i32 = arith.constant 0 : i32
    %c0_i32_0 = arith.constant 0 : i32
    return %arg0, %c0_i32 : i32, i32
  }
  func.func @transform_2(%arg0: i32) -> (i32, i32) {
    %c0_i32 = arith.constant 0 : i32
    %c0_i32_0 = arith.constant 0 : i32
    %c0_i32_1 = arith.constant 0 : i32
    return %c0_i32, %c0_i32_0 : i32, i32
  }
  func.func @transform_3(%arg0: i32) -> (i32, i32) {
    %c0_i32 = arith.constant 0 : i32
    %c0_i32_0 = arith.constant 0 : i32
    %c0_i32_1 = arith.constant 0 : i32
    return %c0_i32, %c0_i32_0 : i32, i32
  }
  func.func @transform_4(%arg0: i32) -> (i32, i32) {
    %c0_i32 = arith.constant 0 : i32
    %c0_i32_0 = arith.constant 0 : i32
    return %arg0, %c0_i32 : i32, i32
  }
}

</mosaic_0001>

<bundles_post_ra>
// kernel: tpu_custom_call.1
= control target key start
LH: loop header
LB: loop body
LE: loop exit
PB: predicated region body
PF: predicated region fallthrough
CT: control target
= control target key end

     0   :  { %vm30_vm0 = vcmask 261120   ;;  %vm196_vm1 = vcmask 130048   ;;  %vm203_vm2 = vcmask 7168   ;;  %s346_s2 = inlined_call_operand.vmem [shape: f32[32,16], index: 2, kind: input, shape index: {}]   ;;  %s347_s0 = inlined_call_operand.vmem [shape: f32[16,32], index: 0, kind: input, shape index: {}]   ;;  %s348_s3 = inlined_call_operand.vmem [shape: f32[1,16], index: 3, kind: input, shape index: {}]   ;;  %s349_s1 = inlined_call_operand.vmem [shape: f32[16,16], index: 1, kind: input, shape index: {}]   ;;  %s350_s4 = inlined_call_operand.vmem [shape: f32[16,1], index: 4, kind: output, shape index: {}]  }
   0x1   :  { %v19_v0 = vld [vmem:[%s346_s2] sm:$0xff]  ;;  %v20_v1 = vld [vmem:[%s346_s2 + $0x8] sm:$0xff]  ;;  %v21_v2 = vld [vmem:[%s346_s2 + $0x10] sm:$0xff] }
   0x2   :  { %v232_v3 = vpack.c.bf16 %v20_v1, %v19_v0  ;;  %v22_v4 = vld [vmem:[%s346_s2 + $0x18] sm:$0xff]  ;;  %v17_v5 = vld [vmem:[%s347_s0] sm:$0xff]  ;;  %v18_v7 = vld [vmem:[%s347_s0 + $0x8] sm:$0xff] }
   0x3   :  { %v236_v6 = vpack.c.bf16 %v22_v4, %v21_v2  ;;  %229 = vmatprep.mubr.msk.f32.mxu0 %vm30_vm0, %v17_v5  ;;  %v210_v8 = vld [vmem:[%s348_s3] ss:$0 sm:$0xff]  ;;  %v313_v19 = vld [vmem:[%s349_s1 + $0x8] sm:$0xff] }
   0x4   :  { %233 = vmatprep.subr.bf16.mxu0 %v232_v3  ;;  %v318_v20 = vld [vmem:[%s349_s1] sm:$0xff]  ;;  %v321_v21 = vadd.f32 6.0, %v313_v19  ;;  %v171_v25 = vadd.f32 1.0, %v313_v19  ;;  %v173_v26 = vadd.f32 2.0, %v313_v19  ;;  %v177_v34 = vadd.f32 3.0, %v313_v19 }
   0x5   :  { %235 = vmatpush3.bf16.msra.mxu0 %v232_v3  ;;  %v142_v22 = vadd.f32 6.0, %v318_v20  ;;  %v170_v23 = vadd.f32 1.0, %v318_v20  ;;  %v172_v24 = vadd.f32 2.0, %v318_v20  ;;  %v176_v31 = vadd.f32 3.0, %v318_v20 }
   0x6   :  { %237 = vmatprep.subr.bf16.mxu0 %v236_v6  ;;  %v175_v33 = vmul.f32 %v173_v26, %v171_v25  ;;  %v180_v36 = vadd.f32 4.0, %v318_v20  ;;  %v181_v38 = vadd.f32 4.0, %v313_v19  ;;  %v184_v41 = vadd.f32 5.0, %v318_v20 }
   0x7   :  { %v174_v30 = vmul.f32 %v172_v24, %v170_v23  ;;  %v185_v45 = vadd.f32 5.0, %v313_v19  ;;  %v213_v53 = vadd.f32 -0.5, %v142_v22  ;;  %v214_v60 = vadd.f32 -0.5, %v321_v21 }
   0x8   :  { %v179_v37 = vmul.f32 %v177_v34, %v175_v33 }
   0x9   :  { %239 = vmatpush3.bf16.msra.mxu0 %v236_v6  ;;  %v178_v35 = vmul.f32 %v176_v31, %v174_v30 }
   0xa   :  { %v183_v44 = vmul.f32 %v181_v38, %v179_v37 }
   0xb   :  { %v182_v40 = vmul.f32 %v180_v36, %v178_v35 }
   0xc   :  { %230 = vmatmul.mubr.msk.f32.vlgmr.msra.gmra.mrb[0].mxu0 %vm30_vm0, %v18_v7  ;;  %v187_v57 = vmul.f32 %v185_v45, %v183_v44 }
   0xd   :  { %v186_v49 = vmul.f32 %v184_v41, %v182_v40 }
  0xdf   :  { %v231_v9 = vpop.f32.mrb[0].mxu0 }
  0xe0   :  { %v109_v10 = vadd.f32 %v231_v9, %v210_v8  ;;  %v103_v11 = vpop.f32.mrb[1].mxu0 }
  0xe1   :  { %v104_v12 = vadd.f32 %v210_v8, %v103_v11 }
  0xe2   :  { %v115_v13 = vand.u32 2147483647, %v109_v10  ;;  %v113_v51 = vmax.f32 %v109_v10, 0.0 }
  0xe3   :  { %v114_v14 = vand.u32 2147483647, %v104_v12  ;;  %v112_v55 = vmax.f32 %v104_v12, 0.0 }
  0xe4   :  { %v117_v15 = vsub.f32 0.0, %v115_v13 }
  0xe5   :  { %v116_v16 = vsub.f32 0.0, %v114_v14 }
  0xe6   :  { %v120_v17 = vmul.f32 1.442695, %v117_v15 }
  0xe7   :  { %v118_v18 = vmul.f32 1.442695, %v116_v16 }
  0xe8   :  { %240 = vpow2.f32 %v120_v17 }
  0xe9   :  { %242 = vpow2.f32 %v118_v18 }
  0xea   :  { %244 = vrcp.f32 %v321_v21 }
  0xeb   :  { %246 = vrcp.f32 %v142_v22 }
  0xec   :  { %248 = vlog2.f32 %v142_v22 }
  0xed   :  { %250 = vlog2.f32 %v321_v21 }
  0xf2   :  { %v241_v27 = vpop.eup %240 }
  0xf3   :  { %v243_v28 = vpop.eup %242  ;;  %v123_v29 = vadd.f32 1.0, %v241_v27 }
  0xf4   :  { %v122_v32 = vadd.f32 1.0, %v243_v28  ;;  %v245_v39 = vpop.eup %244 }
  0xf5   :  { %252 = vlog2.f32 %v123_v29  ;;  %v247_v42 = vpop.eup %246  ;;  %v149_v59 = vmul.f32 %v245_v39, %v245_v39 }
  0xf6   :  { %254 = vlog2.f32 %v122_v32  ;;  %v249_v43 = vpop.eup %248  ;;  %v148_v48 = vmul.f32 %v247_v42, %v247_v42 }
  0xf7   :  { %v251_v46 = vpop.eup %250  ;;  %v159_v54 = vmul.f32 0.6931472, %v249_v43  ;;  %256 = vlog2.f32 %v186_v49  ;;  %v151_v3 = vmul.f32 0.0027777778, %v149_v59 }
  0xf8   :  { %v161_v61 = vmul.f32 0.6931472, %v251_v46  ;;  %v150_v0 = vmul.f32 0.0027777778, %v148_v48  ;;  %258 = vlog2.f32 %v187_v57 }
  0xf9   :  { %v162_v1 = vmul.f32 %v213_v53, %v159_v54  ;;  %v153_v7 = vsub.f32 0.083333336, %v151_v3 }
  0xfa   :  { %v163_v4 = vmul.f32 %v214_v60, %v161_v61  ;;  %v152_v5 = vsub.f32 0.083333336, %v150_v0 }
  0xfb   :  { %v164_v6 = vsub.f32 %v162_v1, %v142_v22  ;;  %v155_v12 = vmul.f32 %v245_v39, %v153_v7 }
  0xfc   :  { %v165_v8 = vsub.f32 %v163_v4, %v321_v21  ;;  %v154_v9 = vmul.f32 %v247_v42, %v152_v5 }
  0xfd   :  { %v166_v10 = vadd.f32 0.9189385, %v164_v6 }
  0xfe   :  { %v167_v13 = vadd.f32 0.9189385, %v165_v8 }
  0xff   :  { %v253_v47 = vpop.eup %252  ;;  %v168_v16 = vadd.f32 %v166_v10, %v154_v9 }
 0x100   :  { %v255_v50 = vpop.eup %254  ;;  %v127_v52 = vmul.f32 0.6931472, %v253_v47  ;;  %v169_v25 = vadd.f32 %v167_v13, %v155_v12 }
 0x101   :  { %v125_v56 = vmul.f32 0.6931472, %v255_v50  ;;  %v257_v11 = vpop.eup %256 }
 0x102   :  { %v129_v58 = vadd.f32 %v127_v52, %v113_v51  ;;  %v259_v14 = vpop.eup %258  ;;  %v189_v17 = vmul.f32 0.6931472, %v257_v11 }
 0x103   :  { %v128_v62 = vadd.f32 %v125_v56, %v112_v55  ;;  %v191_v26 = vmul.f32 0.6931472, %v259_v14 }
 0x104   :  { %v131_v63 = vadd.f32 1e-06, %v129_v58  ;;  %v192_v28 = vsub.f32 %v168_v16, %v189_v17 }
 0x105   :  { %v130_v2 = vadd.f32 1e-06, %v128_v62  ;;  %v193_v30 = vsub.f32 %v169_v25, %v191_v26 }
 0x106   :  { %260 = vlog2.f32 %v131_v63 }
 0x107   :  { %262 = vlog2.f32 %v130_v2 }
 0x110   :  { %v261_v15 = vpop.eup %260 }
 0x111   :  { %v263_v18 = vpop.eup %262  ;;  %v137_v23 = vmul.f32 0.6931472, %v261_v15 }
 0x112   :  { %v135_v24 = vmul.f32 0.6931472, %v263_v18 }
 0x113   :  { %v139_v27 = vmul.f32 %v137_v23, %v313_v19 }
 0x114   :  { %v138_v22 = vmul.f32 %v135_v24, %v318_v20 }
 0x115   :  { %v141_v29 = vsub.f32 %v139_v27, %v131_v63 }
 0x116   :  { %v140_v21 = vsub.f32 %v138_v22, %v130_v2 }
 0x117   :  { %v195_v33 = vsub.f32 %v141_v29, %v193_v30 }
 0x118   :  { %v194_v31 = vsub.f32 %v140_v21, %v192_v28 }
 0x119   :  { %v200_v34 = vsel %vm196_vm1, %v195_v33, 0.0 }
 0x11a   :  { %v197_v32 = vsel %vm196_vm1, %v194_v31, 0.0 }
 0x11b   :  { %198 = vadd.xlane.f32.xlu0 %v197_v32 }
 0x11f   :  { %201 = vadd.xlane.f32.xlu0 %v200_v34 }
 0x1a8   :  { %v199_v35 = vpop.xlane.xlu0 %198 }
 0x1a9   :  { %204 = vst.msk [vmem:[%s350_s4] sm:$0xff] %vm203_vm2, %v199_v35 }
 0x1ac   :  { %v202_v19 = vpop.xlane.xlu0 %201 }
 0x1ad   :  { %205 = vst.msk [vmem:[%s350_s4 + $0x8] sm:$0xff] %vm203_vm2, %v202_v19 }

</bundles_post_ra>
